<compile_context>
chip_gen: v6e
topology: v6e:2x2x1
jax: 0.10.0
libtpu: 0.0.40
codegen_flags: <defaults>
</compile_context>

<pallas_src>
import functools

import numpy as np
import jax
import jax.numpy as jnp
from jax import lax
from jax.experimental import pallas as pl
from jax.experimental.pallas import tpu as pltpu


def _round_up(x, m):
    return ((x + m - 1) // m) * m


def _vmem_capacity_bytes():
    try:
        return int(pltpu.get_tpu_info().vmem_capacity_bytes)
    except Exception:
        return 64 << 20  # v7x per-TC physical VMEM: most conservative default


def _use_bf16_transcendentals():
    """bf16 EUP exists on v6e/v7x; keep f32 on v5e and older."""
    try:
        kind = jax.devices()[0].device_kind.lower()
    except Exception:
        return False
    return ("v6" in kind) or ("v7" in kind)


def _plan_tiles(B, D):
    """Pick (B_pad, tM, tN, vmem_budget).

    Row tile tM: multiple of 8 dividing B_pad, with >= 2 row blocks whenever
    B >= 16 (v7x megacore).  Column tile tN: full padded width when small
    (block == full dim is always legal), otherwise a multiple of 128.
    The per-step working set (double-buffered bf16 tiles + f32 elementwise
    temps) is kept under a generation-aware VMEM budget.
    """
    vmem_cap = _vmem_capacity_bytes()
    budget = min(vmem_cap // 2, 48 << 20)

    def need(tm, tn):
        # 2x-buffered bf16 audio & motion tiles + ~6x (tm,tn) f32 temps
        # (logits / loglik / masks) + resident (1,8,128) f32 output block.
        return 2 * tm * D * 2 + 2 * D * tn * 2 + 6 * tm * tn * 4 + 2 * 8 * 128 * 4

    if B <= 1024:
        B_pad = _round_up(B, 16) if B >= 16 else _round_up(B, 8)
        tN = B_pad                      # full width: legal for any value
    else:
        tN = 512
        while tN > 128 and need(8, tN) > budget:
            tN //= 2                    # stays a multiple of 128
        B_pad = _round_up(B, tN)

    tM = B_pad if B_pad < 16 else B_pad // 2   # guarantee >= 2 row blocks
    tM = min(tM, 512)
    tM -= tM % 8
    while tM > 8 and (B_pad % tM != 0 or need(tM, tN) > budget):
        tM -= 8
    tM = max(tM, 8)
    return B_pad, tM, tN, int(budget)


def _siglip_kernel(bias_ref, a_ref, m_ref, out_ref, *,
                   b_actual, t_m, t_n, padded, use_bf16_eup):
    """One (row-tile i, column-tile j) block of the SigLIP log-likelihood sum.

    bias_ref : SMEM (1,) f32     logit_bias
    a_ref    : VMEM (tM, D) bf16 L2-normalized audio rows
    m_ref    : VMEM (D, tN) bf16 L2-normalized motion rows, pre-transposed and
                                 pre-scaled by exp(logit_scale)
    out_ref  : VMEM (1, 8, 128) f32 lane-dense partial sum, resident across j
    """
    i = pl.program_id(0)
    j = pl.program_id(1)

    @pl.when(j == 0)
    def _():
        out_ref[...] = jnp.zeros_like(out_ref)

    # (tM, tN) similarity block on the MXU.  RHS was transposed once in the
    # wrapper, so this lowers to a plain matmul with no in-kernel transpose.
    logits = jnp.dot(a_ref[...], m_ref[...],
                     preferred_element_type=jnp.float32) + bias_ref[0]

    # Labels eliminated algebraically: only logsigmoid(-logits) is needed here;
    # the trace(logits) correction is added below on diagonal blocks only.
    # Stable logsigmoid(z) = min(z, 0) - log1p(exp(-|z|)).
    z = -logits
    if use_bf16_eup:
        soft = jnp.log1p(jnp.exp((-jnp.abs(z)).astype(jnp.bfloat16)))
        soft = soft.astype(jnp.float32)
    else:
        soft = jnp.log1p(jnp.exp(-jnp.abs(z)))
    loglik_neg = jnp.minimum(z, 0.0) - soft

    if padded:
        rg = lax.broadcasted_iota(jnp.int32, (t_m, t_n), 0) + i * t_m
        cg = lax.broadcasted_iota(jnp.int32, (t_m, t_n), 1) + j * t_n
        loglik_neg = jnp.where((rg < b_actual) & (cg < b_actual),
                               loglik_neg, 0.0)

    out_ref[...] += jnp.broadcast_to(jnp.sum(loglik_neg), out_ref.shape)

    # Trace correction, only on blocks whose column range overlaps the diagonal.
    # Uses the exact MXU-computed logits so logsigmoid(l) = logsigmoid(-l) + l
    # cancels cleanly in f32.
    row0 = i * t_m
    col0 = j * t_n

    @pl.when((row0 < col0 + t_n) & (col0 < row0 + t_m))
    def _():
        rg = lax.broadcasted_iota(jnp.int32, (t_m, t_n), 0) + row0
        cg = lax.broadcasted_iota(jnp.int32, (t_m, t_n), 1) + col0
        diag = rg == cg
        if padded:
            diag = diag & (rg < b_actual)
        out_ref[...] += jnp.broadcast_to(
            jnp.sum(jnp.where(diag, logits, 0.0)), out_ref.shape)


def siglip_loss(audio_embeds, motion_embeds, logit_scale, logit_bias):
    """audio_embeds, motion_embeds: (B, D). Returns scalar f32 loss."""
    B, D = audio_embeds.shape
    B_pad, tM, tN, vmem_budget = _plan_tiles(B, D)
    assert B_pad % tM == 0 and B_pad % tN == 0, (B_pad, tM, tN)
    n_i = B_pad // tM
    n_j = B_pad // tN
    padded = B_pad != B
    use_bf16_eup = _use_bf16_transcendentals()

    exp_scale = jnp.exp(jnp.asarray(logit_scale, jnp.float32))
    bias = jnp.asarray(logit_bias, jnp.float32).reshape((1,))

    # Normalize once in the wrapper; fold exp(logit_scale) into motion before
    # the bf16 cast; pre-transpose motion so the kernel never transposes.
    a = audio_embeds.astype(jnp.float32)
    a = a * lax.rsqrt(jnp.sum(a * a, axis=-1, keepdims=True))
    m = motion_embeds.astype(jnp.float32)
    m = m * lax.rsqrt(jnp.sum(m * m, axis=-1, keepdims=True)) * exp_scale

    if padded:
        a = jnp.pad(a, ((0, B_pad - B), (0, 0)))
        m = jnp.pad(m, ((0, B_pad - B), (0, 0)))

    a_bf = a.astype(jnp.bfloat16)        # (B_pad, D): halves the audio DMA
    m_t = m.T.astype(jnp.bfloat16)       # (D, B_pad): lane-dense column tiles

    kernel = functools.partial(
        _siglip_kernel, b_actual=B, t_m=tM, t_n=tN,
        padded=padded, use_bf16_eup=use_bf16_eup)

    partials = pl.pallas_call(
        kernel,
        out_shape=jax.ShapeDtypeStruct((n_i, 8, 128), jnp.float32),
        grid=(n_i, n_j),
        in_specs=[
            pl.BlockSpec(memory_space=pltpu.SMEM),           # logit_bias
            pl.BlockSpec((tM, D), lambda i, j: (i, 0)),      # audio row tile
            pl.BlockSpec((D, tN), lambda i, j: (0, j)),      # motion col tile
        ],
        out_specs=pl.BlockSpec((1, 8, 128), lambda i, j: (i, 0, 0)),
        compiler_params=pltpu.CompilerParams(
            dimension_semantics=("parallel", "arbitrary"),
            vmem_limit_bytes=vmem_budget),
    )(bias, a_bf, m_t)

    # loss = mean_i ( -sum_j loglik_ij ) = -sum(loglik) / B
    return -jnp.sum(partials[:, 0, 0]) / jnp.float32(B)


def siglip_loss_ref(audio_embeds, motion_embeds, logit_scale, logit_bias):
    """Pure-JAX f32 reference mirroring the PyTorch module."""
    a = audio_embeds / jnp.linalg.norm(audio_embeds, axis=-1, keepdims=True)
    m = motion_embeds / jnp.linalg.norm(motion_embeds, axis=-1, keepdims=True)
    logits = a @ m.T
    logits = logits * jnp.exp(logit_scale) + logit_bias
    b = a.shape[0]
    labels = 2.0 * jnp.eye(b, dtype=jnp.float32) - 1.0
    loglik = jax.nn.log_sigmoid(labels * logits)
    nll = -jnp.sum(loglik, axis=-1)
    return jnp.mean(nll)


if __name__ == "__main__":
    # Deterministic parameter init (matches nn.Module __init__).
    logit_scale = jnp.float32(np.log(1.0 / 0.07))
    logit_bias = jnp.float32(0.0)

    # Small example inputs: batch=8 embeddings of dim 32.
    key = jax.random.PRNGKey(0)
    ka, km = jax.random.split(key)
    audio_embeds = jax.random.normal(ka, (8, 32), dtype=jnp.float32)
    motion_embeds = jax.random.normal(km, (8, 32), dtype=jnp.float32)

    loss = jax.jit(siglip_loss)(audio_embeds, motion_embeds,
                                logit_scale, logit_bias)
    loss = jax.block_until_ready(loss)

    ref = siglip_loss_ref(audio_embeds, motion_embeds, logit_scale, logit_bias)
    # Tolerance loosened vs. the f32 reference because the MXU operands are
    # bf16 and exp(logit_scale) ~ 14.3 amplifies their rounding; accumulation
    # stays f32 so the loss remains accurate.
    np.testing.assert_allclose(np.asarray(loss), np.asarray(ref),
                               rtol=2e-2, atol=2e-2)

    print("KERNEL_OK")
</pallas_src>

<mosaic_0001>
module attributes {stable_mosaic.version = 11 : i64} {
  func.func @_siglip_kernel(%arg0: i32, %arg1: i32, %arg2: memref<1xf32, #tpu.memory_space<smem>>, %arg3: memref<8x32xbf16, #tpu.memory_space<vmem>>, %arg4: memref<32x8xbf16, #tpu.memory_space<vmem>>, %arg5: memref<1x8x128xf32, #tpu.memory_space<vmem>>) attributes {dimension_semantics = [#tpu.dimension_semantics<parallel>, #tpu.dimension_semantics<arbitrary>], iteration_bounds = array<i64: 1, 1>, scalar_prefetch = 0 : i64, scratch_operands = 0 : i64, tpu.core_type = #tpu.core_type<tc>, window_params = [{transform_indices = @transform_0, window_bounds = array<i64: 1>}, {transform_indices = @transform_1, window_bounds = array<i64: 8, 32>}, {transform_indices = @transform_2, window_bounds = array<i64: 32, 8>}, {transform_indices = @transform_3, window_bounds = array<i64: 1, 8, 128>}]} {
    %c0_i32 = arith.constant 0 : i32
    %0 = arith.cmpi eq, %arg1, %c0_i32 : i32
    %1 = arith.extui %0 : i1 to i32
    %c0_i32_0 = arith.constant 0 : i32
    %2 = arith.cmpi ne, %1, %c0_i32_0 : i32
    scf.if %2 {
      %cst_19 = arith.constant 0.000000e+00 : f32
      %36 = vector.broadcast %cst_19 : f32 to vector<1x8x128xf32>
      %c0_20 = arith.constant 0 : index
      %c0_21 = arith.constant 0 : index
      %c0_22 = arith.constant 0 : index
      %37 = vector.load %arg5[%c0_20, %c0_21, %c0_22] : memref<1x8x128xf32, #tpu.memory_space<vmem>>, vector<1x8x128xf32>
      tpu.vector_store %arg5[%c0_20, %c0_21, %c0_22], %36 {strides = array<i32>} : memref<1x8x128xf32, #tpu.memory_space<vmem>>, vector<1x8x128xf32>,
    } else {
    }
    %c0 = arith.constant 0 : index
    %c0_1 = arith.constant 0 : index
    %3 = vector.load %arg3[%c0, %c0_1] : memref<8x32xbf16, #tpu.memory_space<vmem>>, vector<8x32xbf16>
    %c0_2 = arith.constant 0 : index
    %c0_3 = arith.constant 0 : index
    %4 = vector.load %arg4[%c0_2, %c0_3] : memref<32x8xbf16, #tpu.memory_space<vmem>>, vector<32x8xbf16>
    %cst = arith.constant dense<0.000000e+00> : vector<8x8xf32>
    %5 = tpu.matmul %3, %4, %cst {dimension_numbers = #tpu.dot_dimension_numbers<[1], [0], [0], [1], [0, 0, 1, 1], [], []>} : vector<8x32xbf16>, vector<32x8xbf16>, vector<8x8xf32> -> vector<8x8xf32>
    %c0_4 = arith.constant 0 : index
    %6 = memref.load %arg2[%c0_4] : memref<1xf32, #tpu.memory_space<smem>>
    %7 = vector.broadcast %6 : f32 to vector<8x8xf32>
    %8 = arith.addf %5, %7 : vector<8x8xf32>
    %cst_5 = arith.constant 0.000000e+00 : f32
    %9 = vector.broadcast %cst_5 : f32 to vector<8x8xf32>
    %10 = arith.subf %9, %8 : vector<8x8xf32>
    %11 = math.absf %10 : vector<8x8xf32>
    %cst_6 = arith.constant 0.000000e+00 : f32
    %12 = vector.broadcast %cst_6 : f32 to vector<8x8xf32>
    %13 = arith.subf %12, %11 : vector<8x8xf32>
    %14 = math.exp %13 : vector<8x8xf32>
    %15 = math.log1p %14 : vector<8x8xf32>
    %cst_7 = arith.constant 0.000000e+00 : f32
    %16 = vector.broadcast %cst_7 : f32 to vector<8x8xf32>
    %17 = arith.minimumf %10, %16 : vector<8x8xf32>
    %18 = arith.subf %17, %15 : vector<8x8xf32>
    %c0_8 = arith.constant 0 : index
    %c0_9 = arith.constant 0 : index
    %c0_10 = arith.constant 0 : index
    %19 = vector.load %arg5[%c0_8, %c0_9, %c0_10] : memref<1x8x128xf32, #tpu.memory_space<vmem>>, vector<1x8x128xf32>
    %20 = vector.shape_cast %18 : vector<8x8xf32> to vector<1x8x8xf32>
    %cst_11 = arith.constant dense<0.000000e+00> : vector<1xf32>
    %21 = vector.multi_reduction <add>, %20, %cst_11 [1, 2] : vector<1x8x8xf32> to vector<1xf32>
    %22 = vector.shape_cast %21 : vector<1xf32> to vector<1x1x1xf32>
    %23 = vector.extract %22[0, 0, 0] : f32 from vector<1x1x1xf32>
    %24 = vector.broadcast %23 : f32 to vector<1x8x128xf32>
    %25 = arith.addf %19, %24 : vector<1x8x128xf32>
    %c0_12 = arith.constant 0 : index
    %c0_13 = arith.constant 0 : index
    %c0_14 = arith.constant 0 : index
    %26 = vector.load %arg5[%c0_12, %c0_13, %c0_14] : memref<1x8x128xf32, #tpu.memory_space<vmem>>, vector<1x8x128xf32>
    tpu.vector_store %arg5[%c0_12, %c0_13, %c0_14], %25 {strides = array<i32>} : memref<1x8x128xf32, #tpu.memory_space<vmem>>, vector<1x8x128xf32>,
    %c8_i32 = arith.constant 8 : i32
    %27 = arith.muli %arg0, %c8_i32 : i32
    %c8_i32_15 = arith.constant 8 : i32
    %28 = arith.muli %arg1, %c8_i32_15 : i32
    %c8_i32_16 = arith.constant 8 : i32
    %29 = arith.addi %28, %c8_i32_16 : i32
    %30 = arith.cmpi slt, %27, %29 : i32
    %c8_i32_17 = arith.constant 8 : i32
    %31 = arith.addi %27, %c8_i32_17 : i32
    %32 = arith.cmpi slt, %28, %31 : i32
    %33 = arith.andi %30, %32 : i1
    %34 = arith.extui %33 : i1 to i32
    %c0_i32_18 = arith.constant 0 : i32
    %35 = arith.cmpi ne, %34, %c0_i32_18 : i32
    scf.if %35 {
      %36 = tpu.iota {dimensions = array<i32: 0>} : vector<8x8xi32>
      %37 = vector.broadcast %27 : i32 to vector<8x8xi32>
      %38 = arith.addi %36, %37 : vector<8x8xi32>
      %39 = tpu.iota {dimensions = array<i32: 1>} : vector<8x8xi32>
      %40 = vector.broadcast %28 : i32 to vector<8x8xi32>
      %41 = arith.addi %39, %40 : vector<8x8xi32>
      %42 = arith.cmpi eq, %38, %41 : vector<8x8xi32>
      %c0_19 = arith.constant 0 : index
      %c0_20 = arith.constant 0 : index
      %c0_21 = arith.constant 0 : index
      %43 = vector.load %arg5[%c0_19, %c0_20, %c0_21] : memref<1x8x128xf32, #tpu.memory_space<vmem>>, vector<1x8x128xf32>
      %cst_22 = arith.constant 0.000000e+00 : f32
      %44 = vector.broadcast %cst_22 : f32 to vector<8x8xf32>
      %45 = arith.select %42, %8, %44 : vector<8x8xi1>, vector<8x8xf32>
      %46 = vector.shape_cast %45 : vector<8x8xf32> to vector<1x8x8xf32>
      %cst_23 = arith.constant dense<0.000000e+00> : vector<1xf32>
      %47 = vector.multi_reduction <add>, %46, %cst_23 [1, 2] : vector<1x8x8xf32> to vector<1xf32>
      %48 = vector.shape_cast %47 : vector<1xf32> to vector<1x1x1xf32>
      %49 = vector.extract %48[0, 0, 0] : f32 from vector<1x1x1xf32>
      %50 = vector.broadcast %49 : f32 to vector<1x8x128xf32>
      %51 = arith.addf %43, %50 : vector<1x8x128xf32>
      %c0_24 = arith.constant 0 : index
      %c0_25 = arith.constant 0 : index
      %c0_26 = arith.constant 0 : index
      %52 = vector.load %arg5[%c0_24, %c0_25, %c0_26] : memref<1x8x128xf32, #tpu.memory_space<vmem>>, vector<1x8x128xf32>
      tpu.vector_store %arg5[%c0_24, %c0_25, %c0_26], %51 {strides = array<i32>} : memref<1x8x128xf32, #tpu.memory_space<vmem>>, vector<1x8x128xf32>,
    } else {
    }
    return
  }
  func.func @transform_0(%arg0: i32, %arg1: i32) -> i32 {
    %c0_i32 = arith.constant 0 : i32
    %c0_i32_0 = arith.constant 0 : i32
    return %c0_i32 : i32
  }
  func.func @transform_1(%arg0: i32, %arg1: i32) -> (i32, i32) {
    %c0_i32 = arith.constant 0 : i32
    %c0_i32_0 = arith.constant 0 : i32
    return %arg0, %c0_i32 : i32, i32
  }
  func.func @transform_2(%arg0: i32, %arg1: i32) -> (i32, i32) {
    %c0_i32 = arith.constant 0 : i32
    %c0_i32_0 = arith.constant 0 : i32
    return %c0_i32, %arg1 : i32, i32
  }
  func.func @transform_3(%arg0: i32, %arg1: i32) -> (i32, i32, i32) {
    %c0_i32 = arith.constant 0 : i32
    %c0_i32_0 = arith.constant 0 : i32
    %c0_i32_1 = arith.constant 0 : i32
    return %arg0, %c0_i32, %c0_i32_0 : i32, i32, i32
  }
}

</mosaic_0001>

<bundles_post_ra>
// kernel: siglip_loss.1
= control target key start
LH: loop header
LB: loop body
LE: loop exit
PB: predicated region body
PF: predicated region fallthrough
CT: control target
= control target key end

     0   :  { %v179_v0 = vmov 0.0   ;;  %vm180_vm0 = vmmov 0   ;;  %vm40_vm1 = vcmask 261120   ;;  %v125_v17 = vlaneseq  ;;  %s216_s2 = inlined_call_operand.vmem [shape: bf16[32,8], index: 2, kind: input, shape index: {}]   ;;  %s217_s1 = inlined_call_operand.vmem [shape: bf16[8,32], index: 1, kind: input, shape index: {}]   ;;  %s218_s0 = inlined_call_operand.<no memory space> [shape: f32[1], index: 0, kind: input, shape index: {}]   ;;  %s219_s3 = inlined_call_operand.vmem [shape: f32[1,8,128], index: 3, kind: output, shape index: {}]  }
   0x1   :  { %159 = vmatprep.subr.bf16.mxu0 %v179_v0  ;;  %v173_v1 = vld [vmem:[%s216_s2 + $0x8] sm:$0xff]   ;;  %163 = vmatprep.mubr.msk.bf16.mxu0 %vm180_vm0, %v179_v0  ;;  %v174_v2 = vld [vmem:[%s216_s2] sm:$0xff]   ;;  %v27_v4 = vstv %s218_s0  ;;  %vm101_vm4 = vcmask 64512  }
   0x2   :  { %160 = vmatpush3.bf16.msra.mxu0 %v173_v1  ;;  %v21_v3 = vld [vmem:[%s217_s1] sm:$0xf]  ;;  %v126_v21 = vshrl.u32 %v125_v17, 7  ;;  %v130_v22 = vand.u32 127, %v125_v17 }
   0x3   :  { %161 = vmatprep.subr.bf16.mxu0 %v179_v0 }
   0x4   :  { %vm133_vm3 = vcmp.eq.s32.totalorder %v126_v21, %v130_v22 }
   0x6   :  { %162 = vmatpush3.bf16.msra.mxu0 %v174_v2 }
   0x9   :  { %164 = vmatmul.mubr.msk.bf16.vlgmr.msra.gmra.mxu0 %vm40_vm1, %v21_v3 }
  0xc9   :  { %v78_v5 = vpop.f32.mrf.mxu0 }
  0xca   :  { %v79_v6 = vadd.f32 %v78_v5, %v27_v4 }
  0xcb   :  { %v165_v7 = vpop.f32.mrf.mxu0 }
  0xcc   :  { %v84_v8 = vsub.f32 0.0, %v79_v6  ;;  %v135_v29 = vsel %vm133_vm3, %v79_v6, 0.0 }
  0xcd   :  { %v81_v9 = vpop.f32.mrf.mxu0  ;;  %v136_v30 = vsel %vm101_vm4, %v135_v29, 0.0 }
  0xce   :  { %v85_v10 = vand.u32 2147483647, %v84_v8  ;;  %v98_v25 = vmin.f32 %v84_v8, 0.0 }
  0xcf   :  { %v166_v11 = vpop.f32.mrf.mxu0 }
  0xd0   :  { %v86_v12 = vsub.f32 0.0, %v85_v10 }
  0xd2   :  { %v87_v13 = vmul.f32 1.442695, %v86_v12 }
  0xd4   :  { %175 = vpow2.f32 %v87_v13 }
  0xe1   :  { %v176_v14 = vpop.eup %175 }
  0xe2   :  { %v89_v15 = vadd.f32 1.0, %v176_v14  ;;  %v92_v16 = vmul.f32 -0.5, %v176_v14  ;;  %v95_v19 = vand.u32 2147483647, %v176_v14 }
  0xe4   :  { %177 = vlog2.f32 %v89_v15  ;;  %v93_v18 = vadd.f32 1.0, %v92_v16  ;;  %vm96_vm2 = vcmp.lt.f32.partialorder %v95_v19, 0.0004427343 }
  0xe6   :  { %v94_v24 = vmul.f32 %v176_v14, %v93_v18 }
  0xf1   :  { %v178_v20 = vpop.eup %177 }
  0xf2   :  { %v91_v23 = vmul.f32 0.6931472, %v178_v20 }
  0xf4   :  { %v97_v26 = vsel %vm96_vm2, %v94_v24, %v91_v23 }
  0xf5   :  { %v99_v27 = vsub.f32 %v98_v25, %v97_v26 }
  0xf7   :  { %v102_v28 = vsel %vm101_vm4, %v99_v27, 0.0 }
  0xf8   :  { %103 = vadd.xlane.f32.xlu0 %v102_v28 }
  0xfc   :  { %137 = vadd.xlane.f32.xlu0 %v136_v30 }
 0x181   :  { %v104_v31 = vpop.xlane.xlu0 %103 }
 0x182   :  { %v105_v32 = vrot.slane %v104_v31, 4 }
 0x184   :  { %v106_v33 = vadd.f32 %v105_v32, %v104_v31 }
 0x185   :  { %v138_v34 = vpop.xlane.xlu0 %137 }
 0x186   :  { %v107_v35 = vrot.slane %v106_v33, 2  ;;  %v139_v36 = vrot.slane %v138_v34, 4 }
 0x188   :  { %v140_v37 = vadd.f32 %v139_v36, %v138_v34  ;;  %v108_v38 = vadd.f32 %v107_v35, %v106_v33 }
 0x18a   :  { %v141_v39 = vrot.slane %v140_v37, 2  ;;  %v109_v40 = vrot.slane %v108_v38, 1 }
 0x18c   :  { %v142_v41 = vadd.f32 %v141_v39, %v140_v37  ;;  %v110_v42 = vadd.f32 %v109_v40, %v108_v38 }
 0x18e   :  { %167 = vpush %v110_v42  ;;  %v143_v43 = vrot.slane %v142_v41, 1 }
 0x190   :  { %v144_v44 = vadd.f32 %v143_v43, %v142_v41 }
 0x192   :  { %169 = vpush %v144_v44 }
 0x1bf   :  { %s168_s0 = spop %167 }
 0x1c0   :  { %v112_v45 = vstv %s168_s0 }
 0x1c3   :  { %s170_s1 = spop %169 }
 0x1c4   :  { %v146_v46 = vstv %s170_s1 }
 0x1c5   :  { %v147_v47 = vadd.f32 %v146_v46, %v112_v45 }
 0x1c7   :  { %148 = vst [vmem:[%s219_s3] sm:$0xff] %v147_v47 }

</bundles_post_ra>
